<compile_context>
chip_gen: v5e
topology: v5e:2x2
jax: 0.10.0
libtpu: 0.0.40
codegen_flags: <defaults>
</compile_context>

<pallas_src>
import functools

import jax
import jax.numpy as jnp
from jax import lax
from jax.experimental import pallas as pl
from jax.experimental.pallas import tpu as pltpu


def _round_up(n, m):
    return (n + m - 1) // m * m


def _ppo_kernel(action_dim,
                x_ref, w1_ref, b1_ref, w2_ref, b2_ref,
                wh1_ref, bh1_ref, wh2_ref, bh2_ref,
                out_ref):
    wdt = w1_ref.dtype
    x = x_ref[...]

    # ---- shared trunk: Linear -> ReLU -> (Dropout=id) -> Linear -> ReLU -> (Dropout=id)
    h1 = jnp.dot(x, w1_ref[...], preferred_element_type=jnp.float32) + b1_ref[...]
    h1 = jnp.maximum(h1, 0.0)
    h2 = jnp.dot(h1.astype(wdt), w2_ref[...],
                 preferred_element_type=jnp.float32) + b2_ref[...]
    h2 = jnp.maximum(h2, 0.0)

    # ---- fused actor/critic first layers: single matmul, cols [0:HALF_P) actor,
    #      cols [HALF_P:2*HALF_P) critic (padding cols are exactly 0 after ReLU).
    h3 = jnp.dot(h2.astype(wdt), wh1_ref[...],
                 preferred_element_type=jnp.float32) + bh1_ref[...]
    h3 = jnp.maximum(h3, 0.0)

    # ---- fused final layers into one lane-dense (TB, 128) slab:
    #      cols [0, action_dim) -> actor logits, col action_dim -> critic value.
    fused = jnp.dot(h3.astype(wdt), wh2_ref[...],
                    preferred_element_type=jnp.float32) + bh2_ref[...]

    col = lax.broadcasted_iota(jnp.int32, fused.shape, 1)
    is_actor = col < action_dim

    # Softmax over the actor columns only (padded/value columns masked to -1e30
    # so they contribute exp(...) == 0 to the denominator).
    logits = jnp.where(is_actor, fused, -1e30)
    m = jnp.max(logits, axis=-1, keepdims=True)
    e = jnp.exp(logits - m)
    denom = jnp.sum(e, axis=-1, keepdims=True)
    probs = e * pl.reciprocal(denom, approx=True)

    # probs in the actor columns, raw critic value in col action_dim, 0 elsewhere.
    out_ref[...] = jnp.where(is_actor, probs, fused)


@functools.partial(jax.jit,
                   static_argnames=("action_dim", "block_b", "compute_dtype"))
def ppo_forward(x, params, action_dim=11, block_b=256,
                compute_dtype=jnp.float32):
    (w1, b1, w2, b2, wa1, ba1, wa2, ba2, wc1, bc1, wc2, bc2) = params
    B, input_dim = x.shape
    hidden = w1.shape[1]
    half = wa1.shape[1]
    assert action_dim + 1 <= 128, "fused output slab assumes action_dim + 1 <= 128"

    # Lane-aligned padded dims.
    IN_P = _round_up(input_dim, 128)
    H_P = _round_up(hidden, 128)
    HALF_P = _round_up(half, 128)
    OUT_P = 128

    f32 = jnp.float32

    def place(shape, *blocks):
        a = jnp.zeros(shape, f32)
        for (r, c), blk in blocks:
            a = a.at[r:r + blk.shape[0], c:c + blk.shape[1]].set(blk.astype(f32))
        return a

    # Shared trunk (zero-padded).
    w1p = place((IN_P, H_P), ((0, 0), w1))
    b1p = place((1, H_P), ((0, 0), b1))
    w2p = place((H_P, H_P), ((0, 0), w2))
    b2p = place((1, H_P), ((0, 0), b2))
    # Fused head layer 1: actor half in cols [0:half), critic half at HALF_P.
    wh1 = place((H_P, 2 * HALF_P), ((0, 0), wa1), ((0, HALF_P), wc1))
    bh1 = place((1, 2 * HALF_P), ((0, 0), ba1), ((0, HALF_P), bc1))
    # Fused head layer 2: actor logits in cols [0:action_dim), value in col action_dim.
    wh2 = place((2 * HALF_P, OUT_P), ((0, 0), wa2), ((HALF_P, action_dim), wc2))
    bh2 = place((1, OUT_P), ((0, 0), ba2), ((0, action_dim), bc2))

    # Batch tiling: multiple-of-8 tiles; weights stay resident across the grid.
    TB = min(_round_up(block_b, 8), _round_up(B, 8))
    B_pad = _round_up(B, TB)

    x_p = jnp.zeros((B_pad, IN_P), f32).at[:B, :input_dim].set(x.astype(f32))

    # Optional low-precision MXU path (bf16 weights/activations, f32 accum).
    cdt = compute_dtype
    x_p = x_p.astype(cdt)
    w1p, w2p, wh1, wh2 = (w.astype(cdt) for w in (w1p, w2p, wh1, wh2))

    args = (x_p, w1p, b1p, w2p, b2p, wh1, bh1, wh2, bh2)

    def resident(a):
        return pl.BlockSpec(a.shape, lambda i: (0, 0))

    in_specs = [pl.BlockSpec((TB, IN_P), lambda i: (i, 0))]
    in_specs += [resident(a) for a in args[1:]]

    out = pl.pallas_call(
        functools.partial(_ppo_kernel, action_dim),
        grid=(B_pad // TB,),
        in_specs=in_specs,
        out_specs=pl.BlockSpec((TB, OUT_P), lambda i: (i, 0)),
        out_shape=jax.ShapeDtypeStruct((B_pad, OUT_P), jnp.float32),
        compiler_params=pltpu.CompilerParams(
            dimension_semantics=("parallel",)),
    )(*args)

    probs = out[:B, :action_dim]
    values = out[:B, action_dim:action_dim + 1]
    return probs, values


def ppo_forward_ref(x, params):
    """Pure-JAX reference matching PPONetwork.forward (inference mode)."""
    (w1, b1, w2, b2, wa1, ba1, wa2, ba2, wc1, bc1, wc2, bc2) = params
    h = jnp.maximum(x @ w1 + b1, 0.0)
    h = jnp.maximum(h @ w2 + b2, 0.0)
    a = jnp.maximum(h @ wa1 + ba1, 0.0)
    probs = jax.nn.softmax(a @ wa2 + ba2, axis=-1)
    c = jnp.maximum(h @ wc1 + bc1, 0.0)
    values = c @ wc2 + bc2
    return probs, values


def init_ppo_params(key, input_dim, hidden_dim=256, action_dim=11,
                    dtype=jnp.float32):
    """Deterministic init mirroring PPONetwork._initialize_weights:
    orthogonal(gain=sqrt(2)) everywhere, zero biases, and orthogonal(gain=0.01)
    for the final actor Linear.  Weights are stored as (in, out) for `x @ W`."""
    half = hidden_dim // 2
    gains_shapes = [
        (jnp.sqrt(2.0), (input_dim, hidden_dim)),   # shared.Linear1
        (jnp.sqrt(2.0), (hidden_dim, hidden_dim)),  # shared.Linear2
        (jnp.sqrt(2.0), (hidden_dim, half)),        # actor.Linear1
        (0.01,          (half, action_dim)),        # actor.Linear2 (gain=0.01)
        (jnp.sqrt(2.0), (hidden_dim, half)),        # critic.Linear1
        (jnp.sqrt(2.0), (half, 1)),                 # critic.Linear2
    ]
    keys = jax.random.split(key, len(gains_shapes))
    params = []
    for k, (gain, shape) in zip(keys, gains_shapes):
        w = jax.nn.initializers.orthogonal(scale=gain, column_axis=-1)(
            k, shape, dtype)
        b = jnp.zeros((1, shape[1]), dtype)
        params.extend([w, b])
    return tuple(params)


# TODO(synk): get_action_and_value's Categorical sampling / log-prob / entropy
# are not part of forward() and are left to the host-side JAX wrapper.


if __name__ == "__main__":
    # Small shapes consistent with the module: batch=8, input_dim=32,
    # hidden_dim=32 (-> hidden//2 = 16), action_dim=11.
    B, INPUT_DIM, HIDDEN_DIM, ACTION_DIM = 8, 32, 32, 11

    key = jax.random.PRNGKey(0)
    kx, kp = jax.random.split(key)
    x = jax.random.normal(kx, (B, INPUT_DIM), dtype=jnp.float32)
    params = init_ppo_params(kp, INPUT_DIM, HIDDEN_DIM, ACTION_DIM)

    probs, values = ppo_forward(x, params, action_dim=ACTION_DIM)
    jax.block_until_ready((probs, values))

    ref_probs, ref_values = ppo_forward_ref(x, params)

    assert probs.shape == (B, ACTION_DIM)
    assert values.shape == (B, 1)
    # Loose tolerance accounts for the approx (EUP) reciprocal in the softmax.
    assert jnp.allclose(jnp.sum(probs, axis=-1), 1.0, atol=5e-3)
    assert jnp.allclose(probs, ref_probs, atol=5e-3, rtol=5e-3)
    assert jnp.allclose(values, ref_values, atol=1e-4, rtol=1e-4)

    print("KERNEL_OK")
</pallas_src>

<mosaic_0001>
module attributes {stable_mosaic.version = 11 : i64} {
  func.func @_ppo_kernel(%arg0: i32, %arg1: memref<8x128xf32, #tpu.memory_space<vmem>>, %arg2: memref<128x128xf32, #tpu.memory_space<vmem>>, %arg3: memref<1x128xf32, #tpu.memory_space<vmem>>, %arg4: memref<128x128xf32, #tpu.memory_space<vmem>>, %arg5: memref<1x128xf32, #tpu.memory_space<vmem>>, %arg6: memref<128x256xf32, #tpu.memory_space<vmem>>, %arg7: memref<1x256xf32, #tpu.memory_space<vmem>>, %arg8: memref<256x128xf32, #tpu.memory_space<vmem>>, %arg9: memref<1x128xf32, #tpu.memory_space<vmem>>, %arg10: memref<8x128xf32, #tpu.memory_space<vmem>>) attributes {dimension_semantics = [#tpu.dimension_semantics<parallel>], iteration_bounds = array<i64: 1>, scalar_prefetch = 0 : i64, scratch_operands = 0 : i64, tpu.core_type = #tpu.core_type<tc>, window_params = [{transform_indices = @transform_0, window_bounds = array<i64: 8, 128>}, {pipeline_mode = #tpu.pipeline_mode<synchronous>, transform_indices = @transform_1, window_bounds = array<i64: 128, 128>}, {pipeline_mode = #tpu.pipeline_mode<synchronous>, transform_indices = @transform_2, window_bounds = array<i64: 1, 128>}, {pipeline_mode = #tpu.pipeline_mode<synchronous>, transform_indices = @transform_3, window_bounds = array<i64: 128, 128>}, {pipeline_mode = #tpu.pipeline_mode<synchronous>, transform_indices = @transform_4, window_bounds = array<i64: 1, 128>}, {pipeline_mode = #tpu.pipeline_mode<synchronous>, transform_indices = @transform_5, window_bounds = array<i64: 128, 256>}, {pipeline_mode = #tpu.pipeline_mode<synchronous>, transform_indices = @transform_6, window_bounds = array<i64: 1, 256>}, {pipeline_mode = #tpu.pipeline_mode<synchronous>, transform_indices = @transform_7, window_bounds = array<i64: 256, 128>}, {pipeline_mode = #tpu.pipeline_mode<synchronous>, transform_indices = @transform_8, window_bounds = array<i64: 1, 128>}, {transform_indices = @transform_9, window_bounds = array<i64: 8, 128>}]} {
    %c0 = arith.constant 0 : index
    %c0_0 = arith.constant 0 : index
    %0 = vector.load %arg1[%c0, %c0_0] : memref<8x128xf32, #tpu.memory_space<vmem>>, vector<8x128xf32>
    %c0_1 = arith.constant 0 : index
    %c0_2 = arith.constant 0 : index
    %1 = vector.load %arg2[%c0_1, %c0_2] : memref<128x128xf32, #tpu.memory_space<vmem>>, vector<128x128xf32>
    %cst = arith.constant dense<0.000000e+00> : vector<8x128xf32>
    %2 = tpu.matmul %0, %1, %cst {dimension_numbers = #tpu.dot_dimension_numbers<[1], [0], [0], [1], [0, 0, 1, 1], [], []>} : vector<8x128xf32>, vector<128x128xf32>, vector<8x128xf32> -> vector<8x128xf32>
    %c0_3 = arith.constant 0 : index
    %c0_4 = arith.constant 0 : index
    %3 = vector.load %arg3[%c0_3, %c0_4] : memref<1x128xf32, #tpu.memory_space<vmem>>, vector<1x128xf32>
    %4 = vector.broadcast %3 : vector<1x128xf32> to vector<8x128xf32>
    %5 = arith.addf %2, %4 : vector<8x128xf32>
    %cst_5 = arith.constant 0.000000e+00 : f32
    %6 = vector.broadcast %cst_5 : f32 to vector<8x128xf32>
    %7 = arith.maximumf %5, %6 : vector<8x128xf32>
    %c0_6 = arith.constant 0 : index
    %c0_7 = arith.constant 0 : index
    %8 = vector.load %arg4[%c0_6, %c0_7] : memref<128x128xf32, #tpu.memory_space<vmem>>, vector<128x128xf32>
    %cst_8 = arith.constant dense<0.000000e+00> : vector<8x128xf32>
    %9 = tpu.matmul %7, %8, %cst_8 {dimension_numbers = #tpu.dot_dimension_numbers<[1], [0], [0], [1], [0, 0, 1, 1], [], []>} : vector<8x128xf32>, vector<128x128xf32>, vector<8x128xf32> -> vector<8x128xf32>
    %c0_9 = arith.constant 0 : index
    %c0_10 = arith.constant 0 : index
    %10 = vector.load %arg5[%c0_9, %c0_10] : memref<1x128xf32, #tpu.memory_space<vmem>>, vector<1x128xf32>
    %11 = vector.broadcast %10 : vector<1x128xf32> to vector<8x128xf32>
    %12 = arith.addf %9, %11 : vector<8x128xf32>
    %cst_11 = arith.constant 0.000000e+00 : f32
    %13 = vector.broadcast %cst_11 : f32 to vector<8x128xf32>
    %14 = arith.maximumf %12, %13 : vector<8x128xf32>
    %c0_12 = arith.constant 0 : index
    %c0_13 = arith.constant 0 : index
    %15 = vector.load %arg6[%c0_12, %c0_13] : memref<128x256xf32, #tpu.memory_space<vmem>>, vector<128x256xf32>
    %cst_14 = arith.constant dense<0.000000e+00> : vector<8x256xf32>
    %16 = tpu.matmul %14, %15, %cst_14 {dimension_numbers = #tpu.dot_dimension_numbers<[1], [0], [0], [1], [0, 0, 1, 1], [], []>} : vector<8x128xf32>, vector<128x256xf32>, vector<8x256xf32> -> vector<8x256xf32>
    %c0_15 = arith.constant 0 : index
    %c0_16 = arith.constant 0 : index
    %17 = vector.load %arg7[%c0_15, %c0_16] : memref<1x256xf32, #tpu.memory_space<vmem>>, vector<1x256xf32>
    %18 = vector.broadcast %17 : vector<1x256xf32> to vector<8x256xf32>
    %19 = arith.addf %16, %18 : vector<8x256xf32>
    %cst_17 = arith.constant 0.000000e+00 : f32
    %20 = vector.broadcast %cst_17 : f32 to vector<8x256xf32>
    %21 = arith.maximumf %19, %20 : vector<8x256xf32>
    %c0_18 = arith.constant 0 : index
    %c0_19 = arith.constant 0 : index
    %22 = vector.load %arg8[%c0_18, %c0_19] : memref<256x128xf32, #tpu.memory_space<vmem>>, vector<256x128xf32>
    %cst_20 = arith.constant dense<0.000000e+00> : vector<8x128xf32>
    %23 = tpu.matmul %21, %22, %cst_20 {dimension_numbers = #tpu.dot_dimension_numbers<[1], [0], [0], [1], [0, 0, 1, 1], [], []>} : vector<8x256xf32>, vector<256x128xf32>, vector<8x128xf32> -> vector<8x128xf32>
    %c0_21 = arith.constant 0 : index
    %c0_22 = arith.constant 0 : index
    %24 = vector.load %arg9[%c0_21, %c0_22] : memref<1x128xf32, #tpu.memory_space<vmem>>, vector<1x128xf32>
    %25 = vector.broadcast %24 : vector<1x128xf32> to vector<8x128xf32>
    %26 = arith.addf %23, %25 : vector<8x128xf32>
    %27 = tpu.iota {dimensions = array<i32: 1>} : vector<8x128xi32>
    %c11_i32 = arith.constant 11 : i32
    %28 = vector.broadcast %c11_i32 : i32 to vector<8x128xi32>
    %29 = arith.cmpi slt, %27, %28 : vector<8x128xi32>
    %cst_23 = arith.constant -1.000000e+30 : f32
    %30 = vector.broadcast %cst_23 : f32 to vector<8x128xf32>
    %31 = arith.select %29, %26, %30 : vector<8x128xi1>, vector<8x128xf32>
    %cst_24 = arith.constant dense<0xFF800000> : vector<8xf32>
    %32 = vector.multi_reduction <maximumf>, %31, %cst_24 [1] : vector<8x128xf32> to vector<8xf32>
    %33 = vector.shape_cast %32 : vector<8xf32> to vector<8x1xf32>
    %34 = vector.broadcast %33 : vector<8x1xf32> to vector<8x128xf32>
    %35 = arith.subf %31, %34 : vector<8x128xf32>
    %36 = math.exp %35 : vector<8x128xf32>
    %cst_25 = arith.constant dense<0.000000e+00> : vector<8xf32>
    %37 = vector.multi_reduction <add>, %36, %cst_25 [1] : vector<8x128xf32> to vector<8xf32>
    %38 = vector.shape_cast %37 : vector<8xf32> to vector<8x1xf32>
    %39 = tpu.reciprocal %38 {approx = true} : vector<8x1xf32> -> vector<8x1xf32>
    %40 = vector.broadcast %39 : vector<8x1xf32> to vector<8x128xf32>
    %41 = arith.mulf %36, %40 : vector<8x128xf32>
    %42 = arith.select %29, %41, %26 : vector<8x128xi1>, vector<8x128xf32>
    %c0_26 = arith.constant 0 : index
    %c0_27 = arith.constant 0 : index
    %43 = vector.load %arg10[%c0_26, %c0_27] : memref<8x128xf32, #tpu.memory_space<vmem>>, vector<8x128xf32>
    tpu.vector_store %arg10[%c0_26, %c0_27], %42 {strides = array<i32>} : memref<8x128xf32, #tpu.memory_space<vmem>>, vector<8x128xf32>,
    return
  }
  func.func @transform_0(%arg0: i32) -> (i32, i32) {
    %c0_i32 = arith.constant 0 : i32
    %c0_i32_0 = arith.constant 0 : i32
    return %arg0, %c0_i32 : i32, i32
  }
  func.func @transform_1(%arg0: i32) -> (i32, i32) {
    %c0_i32 = arith.constant 0 : i32
    %c0_i32_0 = arith.constant 0 : i32
    %c0_i32_1 = arith.constant 0 : i32
    return %c0_i32, %c0_i32_0 : i32, i32
  }
  func.func @transform_2(%arg0: i32) -> (i32, i32) {
    %c0_i32 = arith.constant 0 : i32
    %c0_i32_0 = arith.constant 0 : i32
    %c0_i32_1 = arith.constant 0 : i32
    return %c0_i32, %c0_i32_0 : i32, i32
  }
  func.func @transform_3(%arg0: i32) -> (i32, i32) {
    %c0_i32 = arith.constant 0 : i32
    %c0_i32_0 = arith.constant 0 : i32
    %c0_i32_1 = arith.constant 0 : i32
    return %c0_i32, %c0_i32_0 : i32, i32
  }
  func.func @transform_4(%arg0: i32) -> (i32, i32) {
    %c0_i32 = arith.constant 0 : i32
    %c0_i32_0 = arith.constant 0 : i32
    %c0_i32_1 = arith.constant 0 : i32
    return %c0_i32, %c0_i32_0 : i32, i32
  }
  func.func @transform_5(%arg0: i32) -> (i32, i32) {
    %c0_i32 = arith.constant 0 : i32
    %c0_i32_0 = arith.constant 0 : i32
    %c0_i32_1 = arith.constant 0 : i32
    return %c0_i32, %c0_i32_0 : i32, i32
  }
  func.func @transform_6(%arg0: i32) -> (i32, i32) {
    %c0_i32 = arith.constant 0 : i32
    %c0_i32_0 = arith.constant 0 : i32
    %c0_i32_1 = arith.constant 0 : i32
    return %c0_i32, %c0_i32_0 : i32, i32
  }
  func.func @transform_7(%arg0: i32) -> (i32, i32) {
    %c0_i32 = arith.constant 0 : i32
    %c0_i32_0 = arith.constant 0 : i32
    %c0_i32_1 = arith.constant 0 : i32
    return %c0_i32, %c0_i32_0 : i32, i32
  }
  func.func @transform_8(%arg0: i32) -> (i32, i32) {
    %c0_i32 = arith.constant 0 : i32
    %c0_i32_0 = arith.constant 0 : i32
    %c0_i32_1 = arith.constant 0 : i32
    return %c0_i32, %c0_i32_0 : i32, i32
  }
  func.func @transform_9(%arg0: i32) -> (i32, i32) {
    %c0_i32 = arith.constant 0 : i32
    %c0_i32_0 = arith.constant 0 : i32
    return %arg0, %c0_i32 : i32, i32
  }
}

</mosaic_0001>

<bundles_post_ra>
// kernel: ppo_forward.1
= control target key start
LH: loop header
LB: loop body
LE: loop exit
PB: predicated region body
PF: predicated region fallthrough
CT: control target
= control target key end

     0   :  { %s653_s1 = inlined_call_operand.vmem [shape: f32[128,128], index: 1, kind: input, shape index: {}]   ;;  %s654_s3 = inlined_call_operand.vmem [shape: f32[128,128], index: 3, kind: input, shape index: {}]   ;;  %s655_s2 = inlined_call_operand.vmem [shape: f32[1,128], index: 2, kind: input, shape index: {}]   ;;  %s656_s0 = inlined_call_operand.vmem [shape: f32[8,128], index: 0, kind: input, shape index: {}]   ;;  %s657_s4 = inlined_call_operand.vmem [shape: f32[1,128], index: 4, kind: input, shape index: {}]   ;;  %s658_s5 = inlined_call_operand.vmem [shape: f32[128,256], index: 5, kind: input, shape index: {}]   ;;  %s659_s7 = inlined_call_operand.vmem [shape: f32[256,128], index: 7, kind: input, shape index: {}]   ;;  %s660_s8 = inlined_call_operand.vmem [shape: f32[1,128], index: 8, kind: input, shape index: {}]   ;;  %s661_s6 = inlined_call_operand.vmem [shape: f32[1,256], index: 6, kind: input, shape index: {}]   ;;  %s662_s9 = inlined_call_operand.vmem [shape: f32[8,128], index: 9, kind: output, shape index: {}]  }
   0x1   :  { %v48_v0 = vld [vmem:[%s653_s1 + $0x78] sm:$0xff]  ;;  %v47_v1 = vld [vmem:[%s653_s1 + $0x70] sm:$0xff]  ;;  %v46_v2 = vld [vmem:[%s653_s1 + $0x68] sm:$0xff] }
   0x2   :  { %53 = vmatpush.msra.mxu0 %v48_v0  ;;  %v45_v3 = vld [vmem:[%s653_s1 + $0x60] sm:$0xff]  ;;  %v89_v4 = vld [vmem:[%s654_s3 + $0x78] sm:$0xff]  ;;  %v88_v6 = vld [vmem:[%s654_s3 + $0x70] sm:$0xff] }
   0x3   :  { %v44_v5 = vld [vmem:[%s653_s1 + $0x58] sm:$0xff]  ;;  %94 = vmatpush.msra.mxu1 %v89_v4  ;;  %v87_v7 = vld [vmem:[%s654_s3 + $0x68] sm:$0xff]  ;;  %v43_v8 = vld [vmem:[%s653_s1 + $0x50] sm:$0xff] }
   0x4   :  { %54 = vmatpush.msra.mxu0 %v47_v1  ;;  %v86_v9 = vld [vmem:[%s654_s3 + $0x60] sm:$0xff]  ;;  %v42_v10 = vld [vmem:[%s653_s1 + $0x48] sm:$0xff]  ;;  %v85_v11 = vld [vmem:[%s654_s3 + $0x58] sm:$0xff] }
   0x5   :  { %95 = vmatpush.msra.mxu1 %v88_v6  ;;  %v41_v12 = vld [vmem:[%s653_s1 + $0x40] sm:$0xff]  ;;  %v84_v13 = vld [vmem:[%s654_s3 + $0x50] sm:$0xff]  ;;  %v40_v14 = vld [vmem:[%s653_s1 + $0x38] sm:$0xff] }
   0x6   :  { %55 = vmatpush.msra.mxu0 %v46_v2  ;;  %v83_v15 = vld [vmem:[%s654_s3 + $0x48] sm:$0xff]  ;;  %v39_v16 = vld [vmem:[%s653_s1 + $0x30] sm:$0xff]  ;;  %v82_v17 = vld [vmem:[%s654_s3 + $0x40] sm:$0xff] }
   0x7   :  { %96 = vmatpush.msra.mxu1 %v87_v7  ;;  %v38_v18 = vld [vmem:[%s653_s1 + $0x28] sm:$0xff]  ;;  %v81_v19 = vld [vmem:[%s654_s3 + $0x38] sm:$0xff]  ;;  %v37_v20 = vld [vmem:[%s653_s1 + $0x20] sm:$0xff] }
   0x8   :  { %56 = vmatpush.msra.mxu0 %v45_v3  ;;  %v80_v21 = vld [vmem:[%s654_s3 + $0x30] sm:$0xff]  ;;  %v36_v22 = vld [vmem:[%s653_s1 + $0x18] sm:$0xff]  ;;  %v79_v23 = vld [vmem:[%s654_s3 + $0x28] sm:$0xff] }
   0x9   :  { %97 = vmatpush.msra.mxu1 %v86_v9  ;;  %v35_v24 = vld [vmem:[%s653_s1 + $0x10] sm:$0xff]  ;;  %v78_v25 = vld [vmem:[%s654_s3 + $0x20] sm:$0xff]  ;;  %v34_v26 = vld [vmem:[%s653_s1 + $0x8] sm:$0xff] }
   0xa   :  { %57 = vmatpush.msra.mxu0 %v44_v5  ;;  %v77_v27 = vld [vmem:[%s654_s3 + $0x18] sm:$0xff]  ;;  %v33_v28 = vld [vmem:[%s653_s1] sm:$0xff]  ;;  %v76_v30 = vld [vmem:[%s654_s3 + $0x10] sm:$0xff] }
   0xb   :  { %98 = vmatpush.msra.mxu1 %v85_v11  ;;  %v32_v29 = vld [vmem:[%s656_s0] sm:$0xff]  ;;  %v75_v31 = vld [vmem:[%s654_s3 + $0x8] sm:$0xff]  ;;  %v145_v33 = vld [vmem:[%s658_s5 + $0xf0] sm:$0xff] }
   0xc   :  { %58 = vmatpush.msra.mxu0 %v43_v8  ;;  %v74_v32 = vld [vmem:[%s654_s3] sm:$0xff]  ;;  %v146_v34 = vld [vmem:[%s658_s5 + $0xf8] sm:$0xff]  ;;  %153 = vmatpush.msra.mxu2 %v145_v33  ;;  %v144_v36 = vld [vmem:[%s658_s5 + $0xe8] sm:$0xff] }
   0xd   :  { %99 = vmatpush.msra.mxu1 %v84_v13  ;;  %v143_v35 = vld [vmem:[%s658_s5 + $0xe0] sm:$0xff]  ;;  %173 = vmatpush.msra.mxu3 %v146_v34  ;;  %v141_v37 = vld [vmem:[%s658_s5 + $0xd0] sm:$0xff]  ;;  %v142_v38 = vld [vmem:[%s658_s5 + $0xd8] sm:$0xff] }
   0xe   :  { %59 = vmatpush.msra.mxu0 %v42_v10  ;;  %154 = vmatpush.msra.mxu2 %v143_v35  ;;  %v139_v39 = vld [vmem:[%s658_s5 + $0xc0] sm:$0xff]  ;;  %v140_v40 = vld [vmem:[%s658_s5 + $0xc8] sm:$0xff]  ;;  %v137_v41 = vld [vmem:[%s658_s5 + $0xb0] sm:$0xff] }
   0xf   :  { %100 = vmatpush.msra.mxu1 %v83_v15  ;;  %174 = vmatpush.msra.mxu3 %v144_v36  ;;  %v138_v42 = vld [vmem:[%s658_s5 + $0xb8] sm:$0xff]  ;;  %v135_v43 = vld [vmem:[%s658_s5 + $0xa0] sm:$0xff]  ;;  %v136_v44 = vld [vmem:[%s658_s5 + $0xa8] sm:$0xff] }
  0x10   :  { %60 = vmatpush.msra.mxu0 %v41_v12  ;;  %155 = vmatpush.msra.mxu2 %v141_v37  ;;  %v133_v45 = vld [vmem:[%s658_s5 + $0x90] sm:$0xff]  ;;  %v134_v46 = vld [vmem:[%s658_s5 + $0x98] sm:$0xff]  ;;  %v131_v47 = vld [vmem:[%s658_s5 + $0x80] sm:$0xff] }
  0x11   :  { %101 = vmatpush.msra.mxu1 %v82_v17  ;;  %175 = vmatpush.msra.mxu3 %v142_v38  ;;  %v132_v48 = vld [vmem:[%s658_s5 + $0x88] sm:$0xff]  ;;  %v129_v49 = vld [vmem:[%s658_s5 + $0x70] sm:$0xff]  ;;  %v130_v50 = vld [vmem:[%s658_s5 + $0x78] sm:$0xff] }
  0x12   :  { %61 = vmatpush.msra.mxu0 %v40_v14  ;;  %156 = vmatpush.msra.mxu2 %v139_v39  ;;  %v127_v51 = vld [vmem:[%s658_s5 + $0x60] sm:$0xff]  ;;  %v128_v52 = vld [vmem:[%s658_s5 + $0x68] sm:$0xff]  ;;  %v125_v53 = vld [vmem:[%s658_s5 + $0x50] sm:$0xff] }
  0x13   :  { %102 = vmatpush.msra.mxu1 %v81_v19  ;;  %176 = vmatpush.msra.mxu3 %v140_v40  ;;  %v126_v54 = vld [vmem:[%s658_s5 + $0x58] sm:$0xff]  ;;  %v123_v55 = vld [vmem:[%s658_s5 + $0x40] sm:$0xff]  ;;  %v124_v56 = vld [vmem:[%s658_s5 + $0x48] sm:$0xff] }
  0x14   :  { %62 = vmatpush.msra.mxu0 %v39_v16  ;;  %157 = vmatpush.msra.mxu2 %v137_v41  ;;  %v121_v57 = vld [vmem:[%s658_s5 + $0x30] sm:$0xff]  ;;  %v122_v58 = vld [vmem:[%s658_s5 + $0x38] sm:$0xff]  ;;  %v290_v59 = vld [vmem:[%s655_s2] ss:$0 sm:$0xff] }
  0x15   :  { %103 = vmatpush.msra.mxu1 %v80_v21  ;;  %177 = vmatpush.msra.mxu3 %v138_v42  ;;  %v119_v63 = vld [vmem:[%s658_s5 + $0x20] sm:$0xff]  ;;  %v120_v0 = vld [vmem:[%s658_s5 + $0x28] sm:$0xff]  ;;  %v117_v1 = vld [vmem:[%s658_s5 + $0x10] sm:$0xff] }
  0x16   :  { %63 = vmatpush.msra.mxu0 %v38_v18  ;;  %158 = vmatpush.msra.mxu2 %v135_v43  ;;  %v118_v2 = vld [vmem:[%s658_s5 + $0x18] sm:$0xff]  ;;  %v115_v3 = vld [vmem:[%s658_s5] sm:$0xff]  ;;  %v116_v4 = vld [vmem:[%s658_s5 + $0x8] sm:$0xff] }
  0x17   :  { %104 = vmatpush.msra.mxu1 %v79_v23  ;;  %178 = vmatpush.msra.mxu3 %v136_v44  ;;  %v210_v5 = vld [vmem:[%s659_s7 + $0x78] sm:$0xff]  ;;  %v209_v7 = vld [vmem:[%s659_s7 + $0x70] sm:$0xff]  ;;  %v208_v9 = vld [vmem:[%s659_s7 + $0x68] sm:$0xff] }
  0x18   :  { %64 = vmatpush.msra.mxu0 %v37_v20  ;;  %159 = vmatpush.msra.mxu2 %v133_v45  ;;  %v226_v6 = vld [vmem:[%s659_s7 + $0xf8] sm:$0xff]  ;;  %v225_v8 = vld [vmem:[%s659_s7 + $0xf0] sm:$0xff]  ;;  %v224_v10 = vld [vmem:[%s659_s7 + $0xe8] sm:$0xff] }
  0x19   :  { %105 = vmatpush.msra.mxu1 %v78_v25  ;;  %179 = vmatpush.msra.mxu3 %v134_v46  ;;  %v207_v11 = vld [vmem:[%s659_s7 + $0x60] sm:$0xff]  ;;  %v206_v13 = vld [vmem:[%s659_s7 + $0x58] sm:$0xff]  ;;  %v205_v15 = vld [vmem:[%s659_s7 + $0x50] sm:$0xff] }
  0x1a   :  { %65 = vmatpush.msra.mxu0 %v36_v22  ;;  %160 = vmatpush.msra.mxu2 %v131_v47  ;;  %v223_v12 = vld [vmem:[%s659_s7 + $0xe0] sm:$0xff]  ;;  %v222_v14 = vld [vmem:[%s659_s7 + $0xd8] sm:$0xff]  ;;  %v221_v16 = vld [vmem:[%s659_s7 + $0xd0] sm:$0xff] }
  0x1b   :  { %106 = vmatpush.msra.mxu1 %v77_v27  ;;  %180 = vmatpush.msra.mxu3 %v132_v48  ;;  %v204_v17 = vld [vmem:[%s659_s7 + $0x48] sm:$0xff]  ;;  %v203_v19 = vld [vmem:[%s659_s7 + $0x40] sm:$0xff]  ;;  %v202_v21 = vld [vmem:[%s659_s7 + $0x38] sm:$0xff] }
  0x1c   :  { %66 = vmatpush.msra.mxu0 %v35_v24  ;;  %161 = vmatpush.msra.mxu2 %v129_v49  ;;  %v220_v18 = vld [vmem:[%s659_s7 + $0xc8] sm:$0xff]  ;;  %v219_v20 = vld [vmem:[%s659_s7 + $0xc0] sm:$0xff]  ;;  %v218_v22 = vld [vmem:[%s659_s7 + $0xb8] sm:$0xff] }
  0x1d   :  { %107 = vmatpush.msra.mxu1 %v76_v30  ;;  %181 = vmatpush.msra.mxu3 %v130_v50  ;;  %v201_v23 = vld [vmem:[%s659_s7 + $0x30] sm:$0xff]  ;;  %v200_v25 = vld [vmem:[%s659_s7 + $0x28] sm:$0xff]  ;;  %v199_v27 = vld [vmem:[%s659_s7 + $0x20] sm:$0xff]  ;;  %v271_v50 = vlaneseq }
  0x1e   :  { %67 = vmatpush.msra.mxu0 %v34_v26  ;;  %162 = vmatpush.msra.mxu2 %v127_v51  ;;  %v217_v24 = vld [vmem:[%s659_s7 + $0xb0] sm:$0xff]  ;;  %v216_v26 = vld [vmem:[%s659_s7 + $0xa8] sm:$0xff]  ;;  %v214_v30 = vld [vmem:[%s659_s7 + $0x98] sm:$0xff] }
  0x1f   :  { %108 = vmatpush.msra.mxu1 %v75_v31  ;;  %182 = vmatpush.msra.mxu3 %v128_v52  ;;  %v291_v31 = vld [vmem:[%s657_s4] ss:$0 sm:$0xff]  ;;  %v197_v35 = vld [vmem:[%s659_s7 + $0x10] sm:$0xff]  ;;  %v196_v37 = vld [vmem:[%s659_s7 + $0x8] sm:$0xff]  ;;  %v272_v52 = vand.u32 127, %v271_v50 }
  0x20   :  { %68 = vmatpush.msra.mxu0 %v33_v28  ;;  %163 = vmatpush.msra.mxu2 %v125_v53  ;;  %v215_v28 = vld [vmem:[%s659_s7 + $0xa0] sm:$0xff]  ;;  %v213_v36 = vld [vmem:[%s659_s7 + $0x90] sm:$0xff]  ;;  %v212_v38 = vld [vmem:[%s659_s7 + $0x88] sm:$0xff] }
  0x21   :  { %69 = vmatmul.f32.vlgmr.msra.gmra.mxu0 %v32_v29  ;;  %109 = vmatpush.msra.mxu1 %v74_v32  ;;  %v198_v29 = vld [vmem:[%s659_s7 + $0x18] sm:$0xff]  ;;  %v195_v39 = vld [vmem:[%s659_s7] sm:$0xff]  ;;  %vm273_vm0 = vcmp.lt.s32.totalorder %v272_v52, 11 }
  0x22   :  { %183 = vmatpush.msra.mxu3 %v126_v54  ;;  %164 = vmatpush.msra.mxu2 %v123_v55  ;;  %v211_v40 = vld [vmem:[%s659_s7 + $0x80] sm:$0xff] }
  0x23   :  { %231 = vmatpush.msrb.mxu0 %v210_v5  ;;  %251 = vmatpush.msrb.mxu1 %v226_v6  ;;  %v147_v41 = vld [vmem:[%s661_s6] sm:$0x3] }
  0x24   :  { %184 = vmatpush.msra.mxu3 %v124_v56  ;;  %165 = vmatpush.msra.mxu2 %v121_v57  ;;  %v149_v42 = vperm.slane %v147_v41, 0  ;;  %v150_v43 = vperm.slane %v147_v41, 1  ;;  %v292_v51 = vld [vmem:[%s660_s8] ss:$0 sm:$0xff] }
  0x25   :  { %232 = vmatpush.msrb.mxu0 %v209_v7  ;;  %252 = vmatpush.msrb.mxu1 %v225_v8 }
  0x26   :  { %185 = vmatpush.msra.mxu3 %v122_v58  ;;  %166 = vmatpush.msra.mxu2 %v119_v63 }
  0x27   :  { %233 = vmatpush.msrb.mxu0 %v208_v9  ;;  %253 = vmatpush.msrb.mxu1 %v224_v10 }
  0x28   :  { %186 = vmatpush.msra.mxu3 %v120_v0  ;;  %167 = vmatpush.msra.mxu2 %v117_v1 }
  0x29   :  { %234 = vmatpush.msrb.mxu0 %v207_v11  ;;  %254 = vmatpush.msrb.mxu1 %v223_v12 }
  0x2a   :  { %187 = vmatpush.msra.mxu3 %v118_v2  ;;  %168 = vmatpush.msra.mxu2 %v115_v3 }
  0x2b   :  { %235 = vmatpush.msrb.mxu0 %v206_v13  ;;  %255 = vmatpush.msrb.mxu1 %v222_v14 }
  0x2c   :  { %188 = vmatpush.msra.mxu3 %v116_v4 }
  0x2d   :  { %236 = vmatpush.msrb.mxu0 %v205_v15  ;;  %256 = vmatpush.msrb.mxu1 %v221_v16 }
  0x2f   :  { %237 = vmatpush.msrb.mxu0 %v204_v17  ;;  %257 = vmatpush.msrb.mxu1 %v220_v18 }
  0x31   :  { %238 = vmatpush.msrb.mxu0 %v203_v19  ;;  %258 = vmatpush.msrb.mxu1 %v219_v20 }
  0x33   :  { %239 = vmatpush.msrb.mxu0 %v202_v21  ;;  %259 = vmatpush.msrb.mxu1 %v218_v22 }
  0x35   :  { %240 = vmatpush.msrb.mxu0 %v201_v23  ;;  %260 = vmatpush.msrb.mxu1 %v217_v24 }
  0x37   :  { %241 = vmatpush.msrb.mxu0 %v200_v25  ;;  %261 = vmatpush.msrb.mxu1 %v216_v26 }
  0x39   :  { %242 = vmatpush.msrb.mxu0 %v199_v27  ;;  %262 = vmatpush.msrb.mxu1 %v215_v28 }
  0x3b   :  { %243 = vmatpush.msrb.mxu0 %v198_v29  ;;  %263 = vmatpush.msrb.mxu1 %v214_v30 }
  0x3d   :  { %244 = vmatpush.msrb.mxu0 %v197_v35  ;;  %264 = vmatpush.msrb.mxu1 %v213_v36 }
  0x3f   :  { %245 = vmatpush.msrb.mxu0 %v196_v37  ;;  %265 = vmatpush.msrb.mxu1 %v212_v38 }
  0x41   :  { %246 = vmatpush.msrb.mxu0 %v195_v39  ;;  %266 = vmatpush.msrb.mxu1 %v211_v40 }
  0x9e   :  { %v70_v60 = vpop.f32.mrf.mxu0 }
  0x9f   :  { %v71_v61 = vadd.f32 %v290_v59, %v70_v60 }
  0xa1   :  { %v73_v62 = vmax.f32 %v71_v61, 0.0 }
  0xa3   :  { %110 = vmatmul.f32.vlgmr.msra.gmra.mxu1 %v73_v62 }
 0x120   :  { %v111_v32 = vpop.f32.mrf.mxu1 }
 0x121   :  { %v112_v33 = vadd.f32 %v291_v31, %v111_v32 }
 0x123   :  { %v114_v34 = vmax.f32 %v112_v33, 0.0 }
 0x125   :  { %169 = vmatmul.f32.vlgmr.msra.gmra.mxu2 %v114_v34  ;;  %189 = vmatmul.f32.vlgmr.msra.gmra.mxu3 %v114_v34 }
 0x1a8   :  { %v170_v44 = vpop.f32.mrf.mxu2  ;;  %v190_v45 = vpop.f32.mrf.mxu3 }
 0x1a9   :  { %v171_v46 = vadd.f32 %v170_v44, %v149_v42  ;;  %v191_v47 = vadd.f32 %v190_v45, %v150_v43 }
 0x1ab   :  { %v193_v48 = vmax.f32 %v171_v46, 0.0  ;;  %v194_v49 = vmax.f32 %v191_v47, 0.0 }
 0x1ad   :  { %247 = vmatmul.f32.vlgmr.msrb.gmra.mxu0 %v193_v48  ;;  %267 = vmatmul.f32.vlgmr.msrb.gmra.mxu1 %v194_v49 }
 0x22a   :  { %v248_v53 = vpop.f32.mrf.mxu0  ;;  %v268_v55 = vpop.f32.mrf.mxu1 }
 0x22b   :  { %v249_v54 = vadd.f32 %v292_v51, %v248_v53 }
 0x22d   :  { %v269_v56 = vadd.f32 %v268_v55, %v249_v54 }
 0x22f   :  { %v274_v57 = vsel %vm273_vm0, %v269_v56, -1e+30 }
 0x230   :  { %275 = vmax.xlane.f32.xlu0 %v274_v57 }
 0x2a3   :  { %v276_v58 = vpop.xlane.xlu0 %275 }
 0x2a4   :  { %v277_v59 = vsub.f32 %v274_v57, %v276_v58 }
 0x2a6   :  { %v278_v60 = vmul.f32 1.442695, %v277_v59 }
 0x2a8   :  { %293 = vpow2.f32 %v278_v60 }
 0x2ae   :  { %v294_v61 = vpop.eup %293 }
 0x2af   :  { %280 = vadd.xlane.f32.xlu0 %v294_v61 }
 0x322   :  { %v281_v62 = vpop.xlane.xlu0 %280 }
 0x323   :  { %295 = vrcp.f32 %v281_v62 }
 0x329   :  { %v296_v63 = vpop.eup %295 }
 0x32a   :  { %v283_v0 = vmul.f32 %v296_v63, %v294_v61 }
 0x32c   :  { %v284_v1 = vsel %vm273_vm0, %v283_v0, %v269_v56 }
 0x32d   :  { %285 = vst [vmem:[%s662_s9] sm:$0xff] %v284_v1 }

</bundles_post_ra>
